<compile_context>
chip_gen: v7x
topology: tpu7x:2x2x1
jax: 0.10.0
libtpu: 0.0.40
codegen_flags: <defaults>
</compile_context>

<pallas_src>
import functools
import math

import numpy as np
import jax
import jax.numpy as jnp
from jax import lax
from jax.experimental import pallas as pl
from jax.experimental.pallas import tpu as pltpu

D_MODEL = 32
NHEAD = 4
HEAD_DIM = D_MODEL // NHEAD
DIM_FF = 64
EPS = 1e-5
SLAB_W = 8 * D_MODEL + DIM_FF                  # 320 columns

# Column layout of the packed weight rows (slab rows 0:32) and the bias row.
# No slice crosses a 128-lane tile boundary.
SA_QKV = (0, 3 * D_MODEL)                      # 0:96    self-attn Wq|Wk|Wv (Wq pre-scaled)
SA_O = (3 * D_MODEL, 4 * D_MODEL)              # 96:128  self-attn Wo
CA_Q = (4 * D_MODEL, 5 * D_MODEL)              # 128:160 cross-attn Wq (pre-scaled)
CA_KV = (5 * D_MODEL, 7 * D_MODEL)             # 160:224 cross-attn Wk|Wv
CA_O = (7 * D_MODEL, 8 * D_MODEL)              # 224:256 cross-attn Wo
FF_W1 = (8 * D_MODEL, 8 * D_MODEL + DIM_FF)    # 256:320 FFN W1

# Row layout of the 7 misc rows (each [1, D_MODEL]).
MISC_B2, MISC_G1, MISC_BE1, MISC_G2, MISC_BE2, MISC_G3, MISC_BE3 = range(7)


# ---------------------------------------------------------------------------
# In-kernel helpers (pure jnp, traced inside the Pallas kernel body)
# ---------------------------------------------------------------------------
def _layer_norm(x, g, b):
    mu = jnp.mean(x, axis=-1, keepdims=True)
    xc = x - mu
    var = jnp.mean(xc * xc, axis=-1, keepdims=True)
    return xc * lax.rsqrt(var + EPS) * g + b


# ---------------------------------------------------------------------------
# Pallas kernel: whole decoder layer, whole batch, single invocation
# ---------------------------------------------------------------------------
def decoder_layer_kernel(x_ref, mem_ref, slab_ref, out_ref, *,
                         r_w2, r_b, r_misc, r_hm_sa, r_hm_ca,
                         r_bias_sa, r_bias_ca, c_sa, c_ca):
    x = x_ref[...].astype(jnp.float32)        # [Nq, D]   row = t*B + b
    mem = mem_ref[...].astype(jnp.float32)    # [Nm, D]   row = s*B + b
    nq = x.shape[0]

    def proj(inp, cols):
        lo, hi = cols
        return (jnp.dot(inp, slab_ref[0:D_MODEL, lo:hi],
                        preferred_element_type=jnp.float32)
                + slab_ref[r_b:r_b + 1, lo:hi])

    def misc_row(i):
        return slab_ref[r_misc + i:r_misc + i + 1, 0:D_MODEL]

    def attention(q, kv, c, r_hm, r_bias):
        """Multi-head attention, batch folded into rows, heads kept in lanes.

        q: [Nq, D] (already scaled by 1/sqrt(hd) via packed weights),
        kv: [Nk, 2D] fused K|V.  Per-head scores come from one matmul against
        a head-block-diagonal expansion of K (columns head-major, c = h*Nk+j).
        All masks / one-hots are precomputed constants living in the slab:
          * slab[r_hm  : r_hm+c, 0:2D]  head-block-diag mask for the K|V tile
          * slab[r_bias: r_bias+Nq,0:c] additive 0 / -1e30 cross-batch bias
        The per-(row, head) softmax denominator is e @ head_mask, which lands
        already broadcast onto each head's output lanes.
        """
        kv_exp = (jnp.tile(kv, (NHEAD, 1))
                  * slab_ref[r_hm:r_hm + c, 0:2 * D_MODEL])            # [C, 2D]
        scores = lax.dot_general(q, kv_exp[:, :D_MODEL],
                                 (((1,), (1,)), ((), ())),
                                 preferred_element_type=jnp.float32)   # [Nq, C]
        scores = scores + slab_ref[r_bias:r_bias + nq, 0:c]            # batch mask
        e = jnp.exp(scores - jnp.max(scores, axis=-1, keepdims=True))  # masked -> 0
        out = jnp.dot(e, kv_exp[:, D_MODEL:],
                      preferred_element_type=jnp.float32)              # [Nq, D]
        denom = jnp.dot(e, slab_ref[r_hm:r_hm + c, 0:D_MODEL],
                        preferred_element_type=jnp.float32)            # [Nq, D]
        return out * pl.reciprocal(denom, approx=True)

    # ---- self-attention block (dropout1 == identity in eval mode) ----
    qkv = proj(x, SA_QKV)                                              # [Nq, 3D]
    sa = attention(qkv[:, :D_MODEL], qkv[:, D_MODEL:], c_sa, r_hm_sa, r_bias_sa)
    x = _layer_norm(x + proj(sa, SA_O), misc_row(MISC_G1), misc_row(MISC_BE1))

    # ---- cross-attention block (dropout2 == identity) ----
    ca = attention(proj(x, CA_Q), proj(mem, CA_KV), c_ca, r_hm_ca, r_bias_ca)
    x = _layer_norm(x + proj(ca, CA_O), misc_row(MISC_G2), misc_row(MISC_BE2))

    # ---- feed-forward block (relu; dropout/dropout3 == identity) ----
    h = jnp.maximum(proj(x, FF_W1), 0.0)                               # [Nq, FF]
    ff = (jnp.dot(h, slab_ref[r_w2:r_w2 + DIM_FF, 0:D_MODEL],
                  preferred_element_type=jnp.float32)
          + misc_row(MISC_B2))
    x = _layer_norm(x + ff, misc_row(MISC_G3), misc_row(MISC_BE3))

    out_ref[...] = x.astype(out_ref.dtype)
    # TODO(synk): tgt_mask / memory_mask / key_padding_mask and training-mode
    # dropout (would need pltpu.prng_*) are not implemented; matches the
    # unmasked, eval-mode reference semantics.


# ---------------------------------------------------------------------------
# Wrapper
# ---------------------------------------------------------------------------
def transformer_decoder_layer(tgt, memory, slab, layout):
    """tgt: [T, B, D], memory: [S, B, D] (seq-first). Returns [T, B, D].

    Only order-preserving reshapes on the host side (no transposes, no extra
    XLA ops); the kernel runs once (no grid) with 3 input DMAs.
    """
    T, B, D = tgt.shape
    S = memory.shape[0]
    x2d = tgt.reshape(T * B, D)        # row = t*B + b
    m2d = memory.reshape(S * B, D)     # row = s*B + b

    vmem = pl.BlockSpec(memory_space=pltpu.MemorySpace.VMEM)
    out = pl.pallas_call(
        functools.partial(decoder_layer_kernel, **layout),
        out_shape=jax.ShapeDtypeStruct((T * B, D), tgt.dtype),
        in_specs=[vmem, vmem, vmem],
        out_specs=vmem,
    )(x2d, m2d, slab)
    return out.reshape(T, B, D)


# ---------------------------------------------------------------------------
# Deterministic parameter init (shapes follow nn.TransformerDecoderLayer)
# ---------------------------------------------------------------------------
def init_params(key, d_model=D_MODEL, dim_ff=DIM_FF):
    keys = list(jax.random.split(key, 24))
    it = iter(keys)

    def w(shape, scale=0.05):
        return jax.random.normal(next(it), shape, jnp.float32) * scale

    params = []
    # self-attn then cross-attn: wq, wk, wv (pre-transposed), bq, bk, bv, wo, bo
    for _ in range(2):
        params += [
            w((d_model, d_model)), w((d_model, d_model)), w((d_model, d_model)),
            w((1, d_model)), w((1, d_model)), w((1, d_model)),
            w((d_model, d_model)), w((1, d_model)),
        ]
    # feed-forward: linear1 (D -> FF), linear2 (FF -> D), pre-transposed
    params += [w((d_model, dim_ff)), w((1, dim_ff)),
               w((dim_ff, d_model)), w((1, d_model))]
    # layernorm 1/2/3: gamma=1, beta=0 (PyTorch defaults)
    for _ in range(3):
        params += [jnp.ones((1, d_model), jnp.float32),
                   jnp.zeros((1, d_model), jnp.float32)]
    return params


def pack_all(params, T, B, S):
    """Pack the 26 tensors + all shape-dependent static masks into ONE slab.

    Done once at init (host-side numpy), so none of this is per-call cost.
    """
    p = [np.asarray(x, np.float32) for x in params]
    (sa_wq, sa_wk, sa_wv, sa_bq, sa_bk, sa_bv, sa_wo, sa_bo,
     ca_wq, ca_wk, ca_wv, ca_bq, ca_bk, ca_bv, ca_wo, ca_bo,
     w1, b1, w2, b2, g1, be1, g2, be2, g3, be3) = p

    scale = 1.0 / math.sqrt(HEAD_DIM)                 # fold q-scale into weights
    w_d = np.concatenate([sa_wq * scale, sa_wk, sa_wv, sa_wo,
                          ca_wq * scale, ca_wk, ca_wv, ca_wo, w1], axis=1)
    b_d = np.concatenate([sa_bq * scale, sa_bk, sa_bv, sa_bo,
                          ca_bq * scale, ca_bk, ca_bv, ca_bo, b1], axis=1)
    misc = np.concatenate([b2, g1, be1, g2, be2, g3, be3], axis=0)

    nq, nk_sa, nk_ca = T * B, T * B, S * B
    c_sa, c_ca = NHEAD * nk_sa, NHEAD * nk_ca
    assert max(c_sa, c_ca) <= SLAB_W, "attention width exceeds slab width"

    def head_mask2(nk):
        c = NHEAD * nk
        hm = (np.arange(c)[:, None] // nk
              == np.arange(D_MODEL)[None, :] // HEAD_DIM).astype(np.float32)
        return np.concatenate([hm, hm], axis=1)               # [C, 2D] (K|V halves)

    def batch_bias(nk):
        c = NHEAD * nk
        qb = np.arange(nq)[:, None] % B
        kb = (np.arange(c)[None, :] % nk) % B
        return np.where(qb == kb, 0.0, -1e30).astype(np.float32)   # [Nq, C]

    r_w2 = D_MODEL                          # 32
    r_b = r_w2 + DIM_FF                     # 96
    r_misc = r_b + 1                        # 97
    r_hm_sa = r_misc + 7                    # 104
    r_hm_ca = r_hm_sa + c_sa
    r_bias_sa = r_hm_ca + c_ca
    r_bias_ca = r_bias_sa + nq
    rows = r_bias_ca + nq

    slab = np.zeros((rows, SLAB_W), np.float32)
    slab[0:D_MODEL, :] = w_d
    slab[r_w2:r_w2 + DIM_FF, 0:D_MODEL] = w2
    slab[r_b, :] = b_d[0]
    slab[r_misc:r_misc + 7, 0:D_MODEL] = misc
    slab[r_hm_sa:r_hm_sa + c_sa, 0:2 * D_MODEL] = head_mask2(nk_sa)
    slab[r_hm_ca:r_hm_ca + c_ca, 0:2 * D_MODEL] = head_mask2(nk_ca)
    slab[r_bias_sa:r_bias_sa + nq, 0:c_sa] = batch_bias(nk_sa)
    slab[r_bias_ca:r_bias_ca + nq, 0:c_ca] = batch_bias(nk_ca)

    layout = dict(r_w2=r_w2, r_b=r_b, r_misc=r_misc,
                  r_hm_sa=r_hm_sa, r_hm_ca=r_hm_ca,
                  r_bias_sa=r_bias_sa, r_bias_ca=r_bias_ca,
                  c_sa=c_sa, c_ca=c_ca)
    return jnp.asarray(slab), layout


# ---------------------------------------------------------------------------
# Pure-JAX reference (mirrors PyTorch forward, eval mode)
# ---------------------------------------------------------------------------
def reference(tgt, memory, params):
    (sa_wq, sa_wk, sa_wv, sa_bq, sa_bk, sa_bv, sa_wo, sa_bo,
     ca_wq, ca_wk, ca_wv, ca_bq, ca_bk, ca_bv, ca_wo, ca_bo,
     w1, b1, w2, b2, g1, be1, g2, be2, g3, be3) = params

    def ln(x, g, b):
        mu = x.mean(-1, keepdims=True)
        var = ((x - mu) ** 2).mean(-1, keepdims=True)
        return (x - mu) / jnp.sqrt(var + EPS) * g + b

    def mha(xq, xkv, wq, bq, wk, bk, wv, bv, wo, bo):
        T, B, D = xq.shape
        S = xkv.shape[0]
        hd = D // NHEAD
        q = (xq @ wq + bq).reshape(T, B, NHEAD, hd)
        k = (xkv @ wk + bk).reshape(S, B, NHEAD, hd)
        v = (xkv @ wv + bv).reshape(S, B, NHEAD, hd)
        scores = jnp.einsum('tbhd,sbhd->bhts', q, k) / math.sqrt(hd)
        p = jax.nn.softmax(scores, -1)
        o = jnp.einsum('bhts,sbhd->tbhd', p, v).reshape(T, B, D)
        return o @ wo + bo

    x = tgt
    x = ln(x + mha(x, x, sa_wq, sa_bq, sa_wk, sa_bk, sa_wv, sa_bv, sa_wo, sa_bo),
           g1, be1)
    x = ln(x + mha(x, memory, ca_wq, ca_bq, ca_wk, ca_bk, ca_wv, ca_bv, ca_wo, ca_bo),
           g2, be2)
    h = jnp.maximum(x @ w1 + b1, 0.0)
    x = ln(x + (h @ w2 + b2), g3, be3)
    return x


if __name__ == "__main__":
    key = jax.random.PRNGKey(0)
    k_p, k_t, k_m = jax.random.split(key, 3)

    T, S, B = 8, 16, 2
    params = init_params(k_p)
    slab, layout = pack_all(params, T, B, S)
    tgt = jax.random.normal(k_t, (T, B, D_MODEL), jnp.float32)
    memory = jax.random.normal(k_m, (S, B, D_MODEL), jnp.float32)

    out = transformer_decoder_layer(tgt, memory, slab, layout)
    out = jax.block_until_ready(out)

    ref = jax.block_until_ready(reference(tgt, memory, params))
    assert out.shape == (T, B, D_MODEL)
    assert jnp.allclose(out, ref, atol=1e-3, rtol=1e-3), \
        f"max diff {jnp.max(jnp.abs(out - ref))}"

    print("KERNEL_OK")
</pallas_src>

<mosaic_0001>
module attributes {stable_mosaic.version = 11 : i64} {
  func.func @decoder_layer_kernel(%arg0: memref<16x32xf32, #tpu.memory_space<vmem>>, %arg1: memref<32x32xf32, #tpu.memory_space<vmem>>, %arg2: memref<328x320xf32, #tpu.memory_space<vmem>>, %arg3: memref<16x32xf32, #tpu.memory_space<vmem>>) attributes {dimension_semantics = [], scalar_prefetch = 0 : i64, scratch_operands = 0 : i64, tpu.core_type = #tpu.core_type<tc>} {
    %c0 = arith.constant 0 : index
    %c0_0 = arith.constant 0 : index
    %0 = vector.load %arg0[%c0, %c0_0] : memref<16x32xf32, #tpu.memory_space<vmem>>, vector<16x32xf32>
    %c0_1 = arith.constant 0 : index
    %c0_2 = arith.constant 0 : index
    %1 = vector.load %arg1[%c0_1, %c0_2] : memref<32x32xf32, #tpu.memory_space<vmem>>, vector<32x32xf32>
    %c0_3 = arith.constant 0 : index
    %c0_4 = arith.constant 0 : index
    %2 = vector.load %arg2[%c0_3, %c0_4] : memref<328x320xf32, #tpu.memory_space<vmem>>, vector<32x96xf32>
    %cst = arith.constant dense<0.000000e+00> : vector<16x96xf32>
    %3 = tpu.matmul %0, %2, %cst {dimension_numbers = #tpu.dot_dimension_numbers<[1], [0], [0], [1], [0, 0, 1, 1], [], []>} : vector<16x32xf32>, vector<32x96xf32>, vector<16x96xf32> -> vector<16x96xf32>
    %c96 = arith.constant 96 : index
    %c0_5 = arith.constant 0 : index
    %4 = vector.load %arg2[%c96, %c0_5] : memref<328x320xf32, #tpu.memory_space<vmem>>, vector<1x96xf32>
    %5 = vector.broadcast %4 : vector<1x96xf32> to vector<16x96xf32>
    %6 = arith.addf %3, %5 : vector<16x96xf32>
    %7 = vector.extract_strided_slice %6 {offsets = [0, 0], sizes = [16, 32], strides = [1, 1]} : vector<16x96xf32> to vector<16x32xf32>
    %8 = vector.extract_strided_slice %6 {offsets = [0, 32], sizes = [16, 64], strides = [1, 1]} : vector<16x96xf32> to vector<16x64xf32>
    %9 = tpu.concatenate %8, %8, %8, %8 in 0 : vector<16x64xf32>, vector<16x64xf32>, vector<16x64xf32>, vector<16x64xf32> -> vector<64x64xf32>
    %c104 = arith.constant 104 : index
    %c0_6 = arith.constant 0 : index
    %10 = vector.load %arg2[%c104, %c0_6] : memref<328x320xf32, #tpu.memory_space<vmem>>, vector<64x64xf32>
    %11 = arith.mulf %9, %10 : vector<64x64xf32>
    %12 = vector.extract_strided_slice %11 {offsets = [0, 0], sizes = [64, 32], strides = [1, 1]} : vector<64x64xf32> to vector<64x32xf32>
    %cst_7 = arith.constant dense<0.000000e+00> : vector<16x64xf32>
    %13 = tpu.matmul %7, %12, %cst_7 {dimension_numbers = #tpu.dot_dimension_numbers<[1], [1], [0], [0], [0, 0, 1, 0], [], []>} : vector<16x32xf32>, vector<64x32xf32>, vector<16x64xf32> -> vector<16x64xf32>
    %c296 = arith.constant 296 : index
    %c0_8 = arith.constant 0 : index
    %14 = vector.load %arg2[%c296, %c0_8] : memref<328x320xf32, #tpu.memory_space<vmem>>, vector<16x64xf32>
    %15 = arith.addf %13, %14 : vector<16x64xf32>
    %cst_9 = arith.constant dense<0xFF800000> : vector<16xf32>
    %16 = vector.multi_reduction <maximumf>, %15, %cst_9 [1] : vector<16x64xf32> to vector<16xf32>
    %17 = vector.shape_cast %16 : vector<16xf32> to vector<16x1xf32>
    %18 = vector.broadcast %17 : vector<16x1xf32> to vector<16x64xf32>
    %19 = arith.subf %15, %18 : vector<16x64xf32>
    %20 = math.exp %19 : vector<16x64xf32>
    %21 = vector.extract_strided_slice %11 {offsets = [0, 32], sizes = [64, 32], strides = [1, 1]} : vector<64x64xf32> to vector<64x32xf32>
    %cst_10 = arith.constant dense<0.000000e+00> : vector<16x32xf32>
    %22 = tpu.matmul %20, %21, %cst_10 {dimension_numbers = #tpu.dot_dimension_numbers<[1], [0], [0], [1], [0, 0, 1, 1], [], []>} : vector<16x64xf32>, vector<64x32xf32>, vector<16x32xf32> -> vector<16x32xf32>
    %c104_11 = arith.constant 104 : index
    %c0_12 = arith.constant 0 : index
    %23 = vector.load %arg2[%c104_11, %c0_12] : memref<328x320xf32, #tpu.memory_space<vmem>>, vector<64x32xf32>
    %cst_13 = arith.constant dense<0.000000e+00> : vector<16x32xf32>
    %24 = tpu.matmul %20, %23, %cst_13 {dimension_numbers = #tpu.dot_dimension_numbers<[1], [0], [0], [1], [0, 0, 1, 1], [], []>} : vector<16x64xf32>, vector<64x32xf32>, vector<16x32xf32> -> vector<16x32xf32>
    %25 = tpu.reciprocal %24 {approx = true} : vector<16x32xf32> -> vector<16x32xf32>
    %26 = arith.mulf %22, %25 : vector<16x32xf32>
    %c0_14 = arith.constant 0 : index
    %c96_15 = arith.constant 96 : index
    %27 = vector.load %arg2[%c0_14, %c96_15] : memref<328x320xf32, #tpu.memory_space<vmem>>, vector<32x32xf32>
    %cst_16 = arith.constant dense<0.000000e+00> : vector<16x32xf32>
    %28 = tpu.matmul %26, %27, %cst_16 {dimension_numbers = #tpu.dot_dimension_numbers<[1], [0], [0], [1], [0, 0, 1, 1], [], []>} : vector<16x32xf32>, vector<32x32xf32>, vector<16x32xf32> -> vector<16x32xf32>
    %c96_17 = arith.constant 96 : index
    %c96_18 = arith.constant 96 : index
    %29 = vector.load %arg2[%c96_17, %c96_18] : memref<328x320xf32, #tpu.memory_space<vmem>>, vector<1x32xf32>
    %30 = vector.broadcast %29 : vector<1x32xf32> to vector<16x32xf32>
    %31 = arith.addf %28, %30 : vector<16x32xf32>
    %32 = arith.addf %0, %31 : vector<16x32xf32>
    %c98 = arith.constant 98 : index
    %c0_19 = arith.constant 0 : index
    %33 = vector.load %arg2[%c98, %c0_19] : memref<328x320xf32, #tpu.memory_space<vmem>>, vector<1x32xf32>
    %c99 = arith.constant 99 : index
    %c0_20 = arith.constant 0 : index
    %34 = vector.load %arg2[%c99, %c0_20] : memref<328x320xf32, #tpu.memory_space<vmem>>, vector<1x32xf32>
    %cst_21 = arith.constant dense<0.000000e+00> : vector<16xf32>
    %35 = vector.multi_reduction <add>, %32, %cst_21 [1] : vector<16x32xf32> to vector<16xf32>
    %36 = vector.shape_cast %35 : vector<16xf32> to vector<16x1xf32>
    %cst_22 = arith.constant 3.200000e+01 : f32
    %37 = vector.broadcast %cst_22 : f32 to vector<16x1xf32>
    %38 = arith.divf %36, %37 : vector<16x1xf32>
    %39 = vector.broadcast %38 : vector<16x1xf32> to vector<16x32xf32>
    %40 = arith.subf %32, %39 : vector<16x32xf32>
    %41 = arith.mulf %40, %40 : vector<16x32xf32>
    %cst_23 = arith.constant dense<0.000000e+00> : vector<16xf32>
    %42 = vector.multi_reduction <add>, %41, %cst_23 [1] : vector<16x32xf32> to vector<16xf32>
    %43 = vector.shape_cast %42 : vector<16xf32> to vector<16x1xf32>
    %cst_24 = arith.constant 3.200000e+01 : f32
    %44 = vector.broadcast %cst_24 : f32 to vector<16x1xf32>
    %45 = arith.divf %43, %44 : vector<16x1xf32>
    %cst_25 = arith.constant 9.99999974E-6 : f32
    %46 = vector.broadcast %cst_25 : f32 to vector<16x1xf32>
    %47 = arith.addf %45, %46 : vector<16x1xf32>
    %48 = math.rsqrt %47 : vector<16x1xf32>
    %49 = vector.broadcast %48 : vector<16x1xf32> to vector<16x32xf32>
    %50 = arith.mulf %40, %49 : vector<16x32xf32>
    %51 = vector.broadcast %33 : vector<1x32xf32> to vector<16x32xf32>
    %52 = arith.mulf %50, %51 : vector<16x32xf32>
    %53 = vector.broadcast %34 : vector<1x32xf32> to vector<16x32xf32>
    %54 = arith.addf %52, %53 : vector<16x32xf32>
    %c0_26 = arith.constant 0 : index
    %c128 = arith.constant 128 : index
    %55 = vector.load %arg2[%c0_26, %c128] : memref<328x320xf32, #tpu.memory_space<vmem>>, vector<32x32xf32>
    %cst_27 = arith.constant dense<0.000000e+00> : vector<16x32xf32>
    %56 = tpu.matmul %54, %55, %cst_27 {dimension_numbers = #tpu.dot_dimension_numbers<[1], [0], [0], [1], [0, 0, 1, 1], [], []>} : vector<16x32xf32>, vector<32x32xf32>, vector<16x32xf32> -> vector<16x32xf32>
    %c96_28 = arith.constant 96 : index
    %c128_29 = arith.constant 128 : index
    %57 = vector.load %arg2[%c96_28, %c128_29] : memref<328x320xf32, #tpu.memory_space<vmem>>, vector<1x32xf32>
    %58 = vector.broadcast %57 : vector<1x32xf32> to vector<16x32xf32>
    %59 = arith.addf %56, %58 : vector<16x32xf32>
    %c0_30 = arith.constant 0 : index
    %c160 = arith.constant 160 : index
    %60 = vector.load %arg2[%c0_30, %c160] : memref<328x320xf32, #tpu.memory_space<vmem>>, vector<32x64xf32>
    %cst_31 = arith.constant dense<0.000000e+00> : vector<32x64xf32>
    %61 = tpu.matmul %1, %60, %cst_31 {dimension_numbers = #tpu.dot_dimension_numbers<[1], [0], [0], [1], [0, 0, 1, 1], [], []>} : vector<32x32xf32>, vector<32x64xf32>, vector<32x64xf32> -> vector<32x64xf32>
    %c96_32 = arith.constant 96 : index
    %c160_33 = arith.constant 160 : index
    %62 = vector.load %arg2[%c96_32, %c160_33] : memref<328x320xf32, #tpu.memory_space<vmem>>, vector<1x64xf32>
    %63 = vector.broadcast %62 : vector<1x64xf32> to vector<32x64xf32>
    %64 = arith.addf %61, %63 : vector<32x64xf32>
    %65 = tpu.concatenate %64, %64, %64, %64 in 0 : vector<32x64xf32>, vector<32x64xf32>, vector<32x64xf32>, vector<32x64xf32> -> vector<128x64xf32>
    %c168 = arith.constant 168 : index
    %c0_34 = arith.constant 0 : index
    %66 = vector.load %arg2[%c168, %c0_34] : memref<328x320xf32, #tpu.memory_space<vmem>>, vector<128x64xf32>
    %67 = arith.mulf %65, %66 : vector<128x64xf32>
    %68 = vector.extract_strided_slice %67 {offsets = [0, 0], sizes = [128, 32], strides = [1, 1]} : vector<128x64xf32> to vector<128x32xf32>
    %cst_35 = arith.constant dense<0.000000e+00> : vector<16x128xf32>
    %69 = tpu.matmul %59, %68, %cst_35 {dimension_numbers = #tpu.dot_dimension_numbers<[1], [1], [0], [0], [0, 0, 1, 0], [], []>} : vector<16x32xf32>, vector<128x32xf32>, vector<16x128xf32> -> vector<16x128xf32>
    %c312 = arith.constant 312 : index
    %c0_36 = arith.constant 0 : index
    %70 = vector.load %arg2[%c312, %c0_36] : memref<328x320xf32, #tpu.memory_space<vmem>>, vector<16x128xf32>
    %71 = arith.addf %69, %70 : vector<16x128xf32>
    %cst_37 = arith.constant dense<0xFF800000> : vector<16xf32>
    %72 = vector.multi_reduction <maximumf>, %71, %cst_37 [1] : vector<16x128xf32> to vector<16xf32>
    %73 = vector.shape_cast %72 : vector<16xf32> to vector<16x1xf32>
    %74 = vector.broadcast %73 : vector<16x1xf32> to vector<16x128xf32>
    %75 = arith.subf %71, %74 : vector<16x128xf32>
    %76 = math.exp %75 : vector<16x128xf32>
    %77 = vector.extract_strided_slice %67 {offsets = [0, 32], sizes = [128, 32], strides = [1, 1]} : vector<128x64xf32> to vector<128x32xf32>
    %cst_38 = arith.constant dense<0.000000e+00> : vector<16x32xf32>
    %78 = tpu.matmul %76, %77, %cst_38 {dimension_numbers = #tpu.dot_dimension_numbers<[1], [0], [0], [1], [0, 0, 1, 1], [], []>} : vector<16x128xf32>, vector<128x32xf32>, vector<16x32xf32> -> vector<16x32xf32>
    %c168_39 = arith.constant 168 : index
    %c0_40 = arith.constant 0 : index
    %79 = vector.load %arg2[%c168_39, %c0_40] : memref<328x320xf32, #tpu.memory_space<vmem>>, vector<128x32xf32>
    %cst_41 = arith.constant dense<0.000000e+00> : vector<16x32xf32>
    %80 = tpu.matmul %76, %79, %cst_41 {dimension_numbers = #tpu.dot_dimension_numbers<[1], [0], [0], [1], [0, 0, 1, 1], [], []>} : vector<16x128xf32>, vector<128x32xf32>, vector<16x32xf32> -> vector<16x32xf32>
    %81 = tpu.reciprocal %80 {approx = true} : vector<16x32xf32> -> vector<16x32xf32>
    %82 = arith.mulf %78, %81 : vector<16x32xf32>
    %c0_42 = arith.constant 0 : index
    %c224 = arith.constant 224 : index
    %83 = vector.load %arg2[%c0_42, %c224] : memref<328x320xf32, #tpu.memory_space<vmem>>, vector<32x32xf32>
    %cst_43 = arith.constant dense<0.000000e+00> : vector<16x32xf32>
    %84 = tpu.matmul %82, %83, %cst_43 {dimension_numbers = #tpu.dot_dimension_numbers<[1], [0], [0], [1], [0, 0, 1, 1], [], []>} : vector<16x32xf32>, vector<32x32xf32>, vector<16x32xf32> -> vector<16x32xf32>
    %c96_44 = arith.constant 96 : index
    %c224_45 = arith.constant 224 : index
    %85 = vector.load %arg2[%c96_44, %c224_45] : memref<328x320xf32, #tpu.memory_space<vmem>>, vector<1x32xf32>
    %86 = vector.broadcast %85 : vector<1x32xf32> to vector<16x32xf32>
    %87 = arith.addf %84, %86 : vector<16x32xf32>
    %88 = arith.addf %54, %87 : vector<16x32xf32>
    %c100 = arith.constant 100 : index
    %c0_46 = arith.constant 0 : index
    %89 = vector.load %arg2[%c100, %c0_46] : memref<328x320xf32, #tpu.memory_space<vmem>>, vector<1x32xf32>
    %c101 = arith.constant 101 : index
    %c0_47 = arith.constant 0 : index
    %90 = vector.load %arg2[%c101, %c0_47] : memref<328x320xf32, #tpu.memory_space<vmem>>, vector<1x32xf32>
    %cst_48 = arith.constant dense<0.000000e+00> : vector<16xf32>
    %91 = vector.multi_reduction <add>, %88, %cst_48 [1] : vector<16x32xf32> to vector<16xf32>
    %92 = vector.shape_cast %91 : vector<16xf32> to vector<16x1xf32>
    %cst_49 = arith.constant 3.200000e+01 : f32
    %93 = vector.broadcast %cst_49 : f32 to vector<16x1xf32>
    %94 = arith.divf %92, %93 : vector<16x1xf32>
    %95 = vector.broadcast %94 : vector<16x1xf32> to vector<16x32xf32>
    %96 = arith.subf %88, %95 : vector<16x32xf32>
    %97 = arith.mulf %96, %96 : vector<16x32xf32>
    %cst_50 = arith.constant dense<0.000000e+00> : vector<16xf32>
    %98 = vector.multi_reduction <add>, %97, %cst_50 [1] : vector<16x32xf32> to vector<16xf32>
    %99 = vector.shape_cast %98 : vector<16xf32> to vector<16x1xf32>
    %cst_51 = arith.constant 3.200000e+01 : f32
    %100 = vector.broadcast %cst_51 : f32 to vector<16x1xf32>
    %101 = arith.divf %99, %100 : vector<16x1xf32>
    %cst_52 = arith.constant 9.99999974E-6 : f32
    %102 = vector.broadcast %cst_52 : f32 to vector<16x1xf32>
    %103 = arith.addf %101, %102 : vector<16x1xf32>
    %104 = math.rsqrt %103 : vector<16x1xf32>
    %105 = vector.broadcast %104 : vector<16x1xf32> to vector<16x32xf32>
    %106 = arith.mulf %96, %105 : vector<16x32xf32>
    %107 = vector.broadcast %89 : vector<1x32xf32> to vector<16x32xf32>
    %108 = arith.mulf %106, %107 : vector<16x32xf32>
    %109 = vector.broadcast %90 : vector<1x32xf32> to vector<16x32xf32>
    %110 = arith.addf %108, %109 : vector<16x32xf32>
    %c0_53 = arith.constant 0 : index
    %c256 = arith.constant 256 : index
    %111 = vector.load %arg2[%c0_53, %c256] : memref<328x320xf32, #tpu.memory_space<vmem>>, vector<32x64xf32>
    %cst_54 = arith.constant dense<0.000000e+00> : vector<16x64xf32>
    %112 = tpu.matmul %110, %111, %cst_54 {dimension_numbers = #tpu.dot_dimension_numbers<[1], [0], [0], [1], [0, 0, 1, 1], [], []>} : vector<16x32xf32>, vector<32x64xf32>, vector<16x64xf32> -> vector<16x64xf32>
    %c96_55 = arith.constant 96 : index
    %c256_56 = arith.constant 256 : index
    %113 = vector.load %arg2[%c96_55, %c256_56] : memref<328x320xf32, #tpu.memory_space<vmem>>, vector<1x64xf32>
    %114 = vector.broadcast %113 : vector<1x64xf32> to vector<16x64xf32>
    %115 = arith.addf %112, %114 : vector<16x64xf32>
    %cst_57 = arith.constant 0.000000e+00 : f32
    %116 = vector.broadcast %cst_57 : f32 to vector<16x64xf32>
    %117 = arith.maximumf %115, %116 : vector<16x64xf32>
    %c32 = arith.constant 32 : index
    %c0_58 = arith.constant 0 : index
    %118 = vector.load %arg2[%c32, %c0_58] : memref<328x320xf32, #tpu.memory_space<vmem>>, vector<64x32xf32>
    %cst_59 = arith.constant dense<0.000000e+00> : vector<16x32xf32>
    %119 = tpu.matmul %117, %118, %cst_59 {dimension_numbers = #tpu.dot_dimension_numbers<[1], [0], [0], [1], [0, 0, 1, 1], [], []>} : vector<16x64xf32>, vector<64x32xf32>, vector<16x32xf32> -> vector<16x32xf32>
    %c97 = arith.constant 97 : index
    %c0_60 = arith.constant 0 : index
    %120 = vector.load %arg2[%c97, %c0_60] : memref<328x320xf32, #tpu.memory_space<vmem>>, vector<1x32xf32>
    %121 = vector.broadcast %120 : vector<1x32xf32> to vector<16x32xf32>
    %122 = arith.addf %119, %121 : vector<16x32xf32>
    %123 = arith.addf %110, %122 : vector<16x32xf32>
    %c102 = arith.constant 102 : index
    %c0_61 = arith.constant 0 : index
    %124 = vector.load %arg2[%c102, %c0_61] : memref<328x320xf32, #tpu.memory_space<vmem>>, vector<1x32xf32>
    %c103 = arith.constant 103 : index
    %c0_62 = arith.constant 0 : index
    %125 = vector.load %arg2[%c103, %c0_62] : memref<328x320xf32, #tpu.memory_space<vmem>>, vector<1x32xf32>
    %cst_63 = arith.constant dense<0.000000e+00> : vector<16xf32>
    %126 = vector.multi_reduction <add>, %123, %cst_63 [1] : vector<16x32xf32> to vector<16xf32>
    %127 = vector.shape_cast %126 : vector<16xf32> to vector<16x1xf32>
    %cst_64 = arith.constant 3.200000e+01 : f32
    %128 = vector.broadcast %cst_64 : f32 to vector<16x1xf32>
    %129 = arith.divf %127, %128 : vector<16x1xf32>
    %130 = vector.broadcast %129 : vector<16x1xf32> to vector<16x32xf32>
    %131 = arith.subf %123, %130 : vector<16x32xf32>
    %132 = arith.mulf %131, %131 : vector<16x32xf32>
    %cst_65 = arith.constant dense<0.000000e+00> : vector<16xf32>
    %133 = vector.multi_reduction <add>, %132, %cst_65 [1] : vector<16x32xf32> to vector<16xf32>
    %134 = vector.shape_cast %133 : vector<16xf32> to vector<16x1xf32>
    %cst_66 = arith.constant 3.200000e+01 : f32
    %135 = vector.broadcast %cst_66 : f32 to vector<16x1xf32>
    %136 = arith.divf %134, %135 : vector<16x1xf32>
    %cst_67 = arith.constant 9.99999974E-6 : f32
    %137 = vector.broadcast %cst_67 : f32 to vector<16x1xf32>
    %138 = arith.addf %136, %137 : vector<16x1xf32>
    %139 = math.rsqrt %138 : vector<16x1xf32>
    %140 = vector.broadcast %139 : vector<16x1xf32> to vector<16x32xf32>
    %141 = arith.mulf %131, %140 : vector<16x32xf32>
    %142 = vector.broadcast %124 : vector<1x32xf32> to vector<16x32xf32>
    %143 = arith.mulf %141, %142 : vector<16x32xf32>
    %144 = vector.broadcast %125 : vector<1x32xf32> to vector<16x32xf32>
    %145 = arith.addf %143, %144 : vector<16x32xf32>
    %c0_68 = arith.constant 0 : index
    %c0_69 = arith.constant 0 : index
    %146 = vector.load %arg3[%c0_68, %c0_69] : memref<16x32xf32, #tpu.memory_space<vmem>>, vector<16x32xf32>
    tpu.vector_store %arg3[%c0_68, %c0_69], %145 {strides = array<i32>} : memref<16x32xf32, #tpu.memory_space<vmem>>, vector<16x32xf32>,
    return
  }
}

</mosaic_0001>

<bundles_post_ra>
// kernel: tpu_custom_call.1
= control target key start
LH: loop header
LB: loop body
LE: loop exit
PB: predicated region body
PF: predicated region fallthrough
CT: control target
= control target key end

     0   :  { %vm26_vm0 = vcmask 261120   ;;  %s2380_s28 = smov 32   ;;  %s2893_s0 = inlined_call_operand.vmem [shape: f32[16,32], index: 0, kind: input, shape index: {}]   ;;  %s2894_s1 = inlined_call_operand.vmem [shape: f32[32,32], index: 1, kind: input, shape index: {}]   ;;  %s2895_s2 = inlined_call_operand.vmem [shape: f32[328,320], index: 2, kind: input, shape index: {}]   ;;  %s2896_s3 = inlined_call_operand.hbm [shape: f32[16,32], index: 3, kind: output, shape index: {}]  }
   0x1   :  { %v2409_v0 = vld [vmem:[%s2895_s2] sm:$0xff]  ;;  %v2414_v1 = vld [vmem:[%s2895_s2 + $0x18] sm:$0xff]  ;;  %v2419_v2 = vld [vmem:[%s2895_s2 + $0x30] sm:$0xff] }
   0x2   :  { %v2258_v3 = vpack.i.bf16 %v2414_v1, %v2409_v0  ;;  %v1980_v4 = vpack.c.bf16 %v2414_v1, %v2409_v0  ;;  %v2428_v5 = vld [vmem:[%s2895_s2 + $0x48] sm:$0xff]  ;;  %v2433_v6 = vld [vmem:[%s2893_s0] sm:$0xff]  ;;  %v108_v10 = vld [vmem:[%s2895_s2 + $0x138] sm:$0xff] }
   0x3   :  { %v1984_v7 = vpack.c.bf16 %v2428_v5, %v2419_v2  ;;  %1738 = vmatprep.mubr.msk.f32.mxu1 %vm26_vm0, %v2433_v6  ;;  %v110_v8 = vld [vmem:[%s2895_s2 + $0x168] sm:$0xff]  ;;  %v111_v9 = vld [vmem:[%s2895_s2 + $0x180] sm:$0xff]  ;;  %v109_v12 = vld [vmem:[%s2895_s2 + $0x150] sm:$0xff]  ;;  %124 = vrot.lane.b32.xlu0 %v108_v10, %s2380_s28 }
   0x4   :  { %1981 = vmatprep.subr.bf16.mxu1 %v1980_v4  ;;  %128 = vrot.lane.b32.xlu1 %v110_v8, %s2380_s28  ;;  %v2449_v11 = vpack.c.bf16 %v111_v9, %v110_v8  ;;  %v113_v13 = vld [vmem:[%s2895_s2 + $0x1b0] sm:$0xff]  ;;  %v112_v14 = vld [vmem:[%s2895_s2 + $0x198] sm:$0xff]  ;;  %v2461_v15 = vpack.c.bf16 %v109_v12, %v108_v10  ;;  %v115_v17 = vld [vmem:[%s2895_s2 + $0x1e0] sm:$0xff] }
   0x5   :  { %1983 = vmatpush3.bf16.msra.mxu1 %v1980_v4  ;;  %v2463_v16 = vpack.c.bf16 %v113_v13, %v112_v14  ;;  %v114_v18 = vld [vmem:[%s2895_s2 + $0x1c8] sm:$0xff] }
   0x6   :  { %8 = vsyncpa [#allocation3], 0  ;;  %1985 = vmatprep.subr.bf16.mxu1 %v1984_v7  ;;  %v2471_v19 = vpack.c.bf16 %v115_v17, %v114_v18  ;;  %v2477_v20 = vld [vmem:[%s2893_s0 + $0x8] sm:$0xff]  ;;  %v2489_v27 = vld [vmem:[%s2895_s2 + $0x120] ss:$0 sm:$0xff]  ;;  %s2381_s15 = smov 96  }
   0x7   :  { %126 = vrot.lane.b32.xlu0 %v109_v12, %s2380_s28  ;;  %s2382_s16 = smov 64   ;;  %vm2502_vm1 = vmpackc.low %vm26_vm0, %vm26_vm0  ;;  %vm279_vm2 = vcmask 523264   ;;  %s2383_s4 = smov [#allocation2]  }
   0x8   :  { %130 = vrot.lane.b32.xlu1 %v111_v9, %s2380_s28  ;;  %s1539_s5 = sshll.u32 %s2383_s4, 4  ;;  %s1540_s5 = int_to_ptr.vmem [resolvable:$true] %s1539_s5 }
   0x9   :  { %1987 = vmatpush3.bf16.msra.mxu1 %v1984_v7  ;;  %s2356_s6 = scalar_lea.vmem %s1540_s5, 256  ;;  %p2361_p1 = scmp.lt.s32.totalorder %s1540_s5, %s1540_s5 }
   0xa   :  { %p2357_p0 = scmp.ne.s32.totalorder %s1540_s5, %s2356_s6  ;;  %p2362_p2 = scmp.lt.s32.totalorder %s2356_s6, %s2356_s6 }
   0xb   :  { %132 = vrot.lane.b32.xlu0 %v112_v14, %s2380_s28  ;;  %v157_v14 = vld [vmem:[%s2895_s2 + $0x390] sm:$0xff] }
   0xc   :  { %1739 = vmatmul.mubr.msk.f32.vlgmr.msra.gmra.mrb[0].mxu1 %vm26_vm0, %v2477_v20  ;;  %134 = vrot.lane.b32.xlu1 %v113_v13, %s2380_s28  ;;  %p2363_p3 = por %p2362_p2, %p2361_p1 }
   0xe   :  { %p2364_p4 = pnand %p2363_p3, %p2357_p0 }
   0xf   :  { %136 = vrot.lane.b32.xlu0 %v114_v18, %s2380_s28 }
  0x10   :  { %138 = vrot.lane.b32.xlu1 %v115_v17, %s2380_s28  ;;  %v156_v17 = vld [vmem:[%s2895_s2 + $0x378] sm:$0xff] }
  0x75   :  { %v125_v22 = vpop.permute.xlu0 %124 }
  0x76   :  { %v129_v21 = vpop.permute.xlu1 %128 }
  0x79   :  { %v127_v24 = vpop.permute.xlu0 %126 }
  0x7a   :  { %v131_v23 = vpop.permute.xlu1 %130 }
  0x7d   :  { %v133_v26 = vpop.permute.xlu0 %132 }
  0x7e   :  { %v135_v25 = vpop.permute.xlu1 %134 }
  0x81   :  { %v137_v32 = vpop.permute.xlu0 %136 }
  0x82   :  { %v139_v29 = vpop.permute.xlu1 %138 }
  0xdf   :  { %v1740_v28 = vpop.f32.mrb[0].mxu1 }
  0xe0   :  { %v105_v30 = vadd.f32 %v1740_v28, %v2489_v27  ;;  %v99_v31 = vpop.f32.mrb[1].mxu1 }
  0xe1   :  { %v100_v33 = vadd.f32 %v99_v31, %v2489_v27 }
  0xe2   :  { %v155_v34 = vmul.f32 %v139_v29, %v105_v30  ;;  %v151_v35 = vmul.f32 %v131_v23, %v105_v30  ;;  %v149_v36 = vmul.f32 %v127_v24, %v105_v30  ;;  %v153_v37 = vmul.f32 %v135_v25, %v105_v30 }
  0xe3   :  { %v154_v38 = vmul.f32 %v137_v32, %v100_v33  ;;  %1757 = vmatprep.mubr.msk.f32.mxu1 %vm26_vm0, %v100_v33  ;;  %v150_v39 = vmul.f32 %v129_v21, %v100_v33  ;;  %v148_v40 = vmul.f32 %v125_v22, %v100_v33  ;;  %v152_v41 = vmul.f32 %v133_v26, %v100_v33 }
  0xe4   :  { %v2263_v26 = vpack.i.bf16 %v2428_v5, %v2419_v2 }
  0xe5   :  { %v2253_v42 = vpack.i.bf16 %v155_v34, %v154_v38  ;;  %v2223_v43 = vpack.i.bf16 %v151_v35, %v150_v39  ;;  %v2218_v44 = vpack.i.bf16 %v149_v36, %v148_v40  ;;  %v2248_v45 = vpack.i.bf16 %v153_v37, %v152_v41 }
  0xe7   :  { %2224 = vrot.lane.b32.xlu1 %v2223_v43, %s2381_s15  ;;  %2219 = vrot.lane.b32.xlu0 %v2218_v44, %s2381_s15 }
  0xeb   :  { %2234 = vrot.lane.b32.xlu1 %v2253_v42, %s2381_s15  ;;  %2229 = vrot.lane.b32.xlu0 %v2248_v45, %s2381_s15 }
  0xef   :  { %2244 = vrot.lane.b32.xlu1 %v2223_v43, %s2382_s16  ;;  %2239 = vrot.lane.b32.xlu0 %v2218_v44, %s2382_s16 }
 0x159   :  { %v2225_v46 = vpop.permute.xlu1 %2224  ;;  %v2220_v47 = vpop.permute.xlu0 %2219 }
 0x15a   :  { %v2227_v48 = vunpack.i.h.bf16 %v2225_v46  ;;  %v2226_v49 = vunpack.i.l.bf16 %v2225_v46  ;;  %v2222_v50 = vunpack.i.h.bf16 %v2220_v47  ;;  %v2221_v51 = vunpack.i.l.bf16 %v2220_v47 }
 0x15c   :  { %v1988_v53 = vpack.c.bf16 %v2222_v50, %v2221_v51  ;;  %v1994_v56 = vpack.c.bf16 %v2227_v48, %v2226_v49 }
 0x15d   :  { %v2235_v54 = vpop.permute.xlu1 %2234  ;;  %v2230_v55 = vpop.permute.xlu0 %2229 }
 0x15e   :  { %1990 = vmatprep.subr.msk.bf16.mxu1 %vm2502_vm1, %v1988_v53  ;;  %v2232_v57 = vunpack.i.h.bf16 %v2230_v55  ;;  %v2231_v58 = vunpack.i.l.bf16 %v2230_v55  ;;  %v2237_v10 = vunpack.i.h.bf16 %v2235_v54  ;;  %v2236_v12 = vunpack.i.l.bf16 %v2235_v54 }
 0x15f   :  { %1993 = vmatpush3.bf16.xpose.msk.msra.mxu1 %vm2502_vm1, %v1988_v53 }
 0x160   :  { %1996 = vmatprep.subr.msk.bf16.mxu1 %vm2502_vm1, %v1994_v56  ;;  %v2000_v8 = vpack.c.bf16 %v2232_v57, %v2231_v58  ;;  %v2006_v13 = vpack.c.bf16 %v2237_v10, %v2236_v12 }
 0x161   :  { %v2245_v59 = vpop.permute.xlu1 %2244  ;;  %v2240_v60 = vpop.permute.xlu0 %2239 }
 0x162   :  { %v2247_v61 = vunpack.i.h.bf16 %v2245_v59  ;;  %v2246_v62 = vunpack.i.l.bf16 %v2245_v59  ;;  %v2242_v63 = vunpack.i.h.bf16 %v2240_v60  ;;  %v2241_v4 = vunpack.i.l.bf16 %v2240_v60  ;;  %v614_v60 = vld [vmem:[%s2895_s2 + $0x38] sm:$0xff] }
 0x164   :  { %v2012_v7 = vpack.c.bf16 %v2242_v63, %v2241_v4  ;;  %v2016_v9 = vpack.c.bf16 %v2247_v61, %v2246_v62  ;;  %v615_v61 = vld [vmem:[%s2895_s2 + $0x50] sm:$0xff]  ;;  %v17_v4 = vld [vmem:[%s2894_s1] sm:$0xff] }
 0x165   :  { %v2566_v62 = vpack.i.bf16 %v615_v61, %v614_v60 }
 0x166   :  { %2013 = vmatprep.subr.bf16.mxu0 %v2012_v7 }
 0x167   :  { %1999 = vmatpush3.bf16.xpose.msk.msra.mxu1 %vm2502_vm1, %v1994_v56  ;;  %2015 = vmatpush3.bf16.msra.mxu0 %v2012_v7 }
 0x168   :  { %2002 = vmatprep.subr.msk.bf16.mxu1 %vm2502_vm1, %v2000_v8  ;;  %2017 = vmatprep.subr.bf16.mxu0 %v2016_v9 }
 0x16b   :  { %2019 = vmatpush3.bf16.msra.mxu0 %v2016_v9 }
 0x16f   :  { %2005 = vmatpush3.bf16.xpose.msk.msra.mxu1 %vm2502_vm1, %v2000_v8 }
 0x170   :  { %2008 = vmatprep.subr.msk.bf16.mxu1 %vm2502_vm1, %v2006_v13 }
 0x177   :  { %2011 = vmatpush3.bf16.xpose.msk.msra.mxu1 %vm2502_vm1, %v2006_v13 }
 0x17e   :  { %1758 = vmatmul.mubr.msk.f32.vlgmr.msra.gmra.mrb[2].mxu1 %vm26_vm0, %v105_v30 }
 0x251   :  { %v1759_v18 = vpop.f32.mrb[2].mxu1 }
 0x252   :  { %v276_v21 = vadd.f32 %v1759_v18, %v157_v14  ;;  %v270_v22 = vpop.f32.mrb[3].mxu1 }
 0x253   :  { %v271_v23 = vadd.f32 %v270_v22, %v156_v17 }
 0x254   :  { %v283_v24 = vsel %vm279_vm2, %v276_v21, -inf }
 0x255   :  { %284 = vmax.xlane.f32.xlu1 %v283_v24  ;;  %v280_v25 = vsel %vm279_vm2, %v271_v23, -inf }
 0x256   :  { %281 = vmax.xlane.f32.xlu0 %v280_v25 }
 0x266   :  { %2254 = vrot.lane.b32.xlu1 %v2253_v42, %s2382_s16 }
 0x26a   :  { %2264 = vrot.lane.b32.xlu1 %v2263_v26, %s2380_s28 }
 0x26c   :  { %2249 = vrot.lane.b32.xlu0 %v2248_v45, %s2382_s16 }
 0x270   :  { %2259 = vrot.lane.b32.xlu0 %v2258_v3, %s2380_s28 }
 0x274   :  { %493 = vrot.lane.b32.xlu0 %v2489_v27, %s2380_s28 }
 0x2e2   :  { %v285_v28 = vpop.xlane.xlu1 %284 }
 0x2e3   :  { %v287_v29 = vsub.f32 %v276_v21, %v285_v28  ;;  %v282_v30 = vpop.xlane.xlu0 %281 }
 0x2e4   :  { %v286_v31 = vsub.f32 %v271_v23, %v282_v30 }
 0x2e5   :  { %v290_v32 = vmul.f32 1.442695, %v287_v29 }
 0x2e6   :  { %v288_v33 = vmul.f32 1.442695, %v286_v31  ;;  %v2255_v34 = vpop.permute.xlu1 %2254  ;;  %v18_v31 = vld [vmem:[%s2894_s1 + $0x8] sm:$0xff] }
 0x2e7   :  { %v2257_v35 = vunpack.i.h.bf16 %v2255_v34  ;;  %v2250_v36 = vpop.permute.xlu0 %2249  ;;  %v2256_v0 = vunpack.i.l.bf16 %v2255_v34  ;;  %v2601_v34 = vld [vmem:[%s2895_s2 + $0x128] ss:$0 sm:$0xff] }
 0x2e8   :  { %2328 = vpow2.f32 %v288_v33  ;;  %v2252_v1 = vunpack.i.h.bf16 %v2250_v36  ;;  %v2251_v3 = vunpack.i.l.bf16 %v2250_v36  ;;  %v20_v33 = vld [vmem:[%s2894_s1 + $0x18] sm:$0xff]  ;;  %v2056_v36 = vpack.c.bf16 %v615_v61, %v614_v60 }
 0x2e9   :  { %2330 = vpow2.f32 %v290_v32  ;;  %v2024_v37 = vpack.c.bf16 %v2257_v35, %v2256_v0  ;;  %v19_v32 = vld [vmem:[%s2894_s1 + $0x10] sm:$0xff] }
 0x2ea   :  { %v2020_v27 = vpack.c.bf16 %v2252_v1, %v2251_v3  ;;  %v2265_v41 = vpop.permute.xlu1 %2264 }
 0x2eb   :  { %v2260_v38 = vpop.permute.xlu0 %2259  ;;  %v2267_v42 = vunpack.i.h.bf16 %v2265_v41  ;;  %v2266_v43 = vunpack.i.l.bf16 %v2265_v41  ;;  %v580_v41 = vld [vmem:[%s2895_s2 + $0x123] ss:$0 sm:$0xff] }
 0x2ec   :  { %2021 = vmatprep.subr.bf16.mxu0 %v2020_v27  ;;  %v2262_v39 = vunpack.i.h.bf16 %v2260_v38  ;;  %v2261_v40 = vunpack.i.l.bf16 %v2260_v38  ;;  %v579_v38 = vld [vmem:[%s2895_s2 + $0x122] ss:$0 sm:$0xff] }
 0x2ed   :  { %2023 = vmatpush3.bf16.msra.mxu0 %v2020_v27 }
 0x2ee   :  { %2025 = vmatprep.subr.bf16.mxu0 %v2024_v37 }
 0x2ef   :  { %v494_v50 = vpop.permute.xlu0 %493 }
 0x2f1   :  { %2027 = vmatpush3.bf16.msra.mxu0 %v2024_v37 }
 0x2f2   :  { %v2329_v2 = vpop.eup %2328  ;;  %2029 = vmatprep.subr.bf16.mxu0 %v2461_v15 }
 0x2f3   :  { %v2331_v5 = vpop.eup %2330  ;;  %1776 = vmatprep.mubr.msk.f32.mxu0 %vm279_vm2, %v2329_v2 }
 0x2f4   :  { %1777 = vmatmul.mubr.msk.f32.vlgmr.msra.gmra.mrb[0].mxu0 %vm279_vm2, %v2331_v5 }
 0x2f5   :  { %2031 = vmatpush3.bf16.msra.mxu0 %v2461_v15  ;;  %1795 = vmatprep.mubr.msk.f32.mxu0 %vm279_vm2, %v2329_v2  ;;  %v2044_v15 = vpack.c.bf16 %v2262_v39, %v2261_v40 }
 0x2f6   :  { %2033 = vmatprep.subr.bf16.mxu0 %v2449_v11 }
 0x2f7   :  { %2045 = vmatprep.subr.bf16.mxu1 %v2044_v15 }
 0x2f8   :  { %2047 = vmatpush3.bf16.msra.mxu1 %v2044_v15 }
 0x2f9   :  { %2035 = vmatpush3.bf16.msra.mxu0 %v2449_v11  ;;  %v2048_v11 = vpack.c.bf16 %v2267_v42, %v2266_v43 }
 0x2fa   :  { %2037 = vmatprep.subr.bf16.mxu0 %v2463_v16 }
 0x2fb   :  { %2049 = vmatprep.subr.bf16.mxu1 %v2048_v11 }
 0x2fc   :  { %2051 = vmatpush3.bf16.msra.mxu1 %v2048_v11 }
 0x2fd   :  { %2039 = vmatpush3.bf16.msra.mxu0 %v2463_v16 }
 0x2fe   :  { %2041 = vmatprep.subr.bf16.mxu0 %v2471_v19 }
 0x301   :  { %2043 = vmatpush3.bf16.msra.mxu0 %v2471_v19 }
 0x304   :  { %1796 = vmatmul.mubr.msk.f32.vlgmr.msra.gmra.mrb[2].mxu0 %vm279_vm2, %v2331_v5 }
 0x3c7   :  { %v1778_v44 = vpop.f32.mrb[0].mxu0 }
 0x3c8   :  { %v388_v16 = vpop.f32.mrb[1].mxu0 }
 0x3d7   :  { %v1797_v45 = vpop.f32.mrb[2].mxu0 }
 0x3d8   :  { %2332 = vrcp.f32 %v1797_v45  ;;  %v463_v46 = vpop.f32.mrb[3].mxu0 }
 0x3d9   :  { %2334 = vrcp.f32 %v463_v46  ;;  %v2622_v46 = vld [vmem:[%s2895_s2 + $0x210] sm:$0xff] }
 0x3e2   :  { %v2333_v19 = vpop.eup %2332 }
 0x3e3   :  { %v2335_v47 = vpop.eup %2334  ;;  %v475_v48 = vmul.f32 %v2333_v19, %v1778_v44  ;;  %v2627_v19 = vld [vmem:[%s2895_s2 + $0x270] sm:$0xff] }
 0x3e4   :  { %v474_v49 = vmul.f32 %v2335_v47, %v388_v16  ;;  %v2632_v47 = vld [vmem:[%s2895_s2 + $0x2d0] sm:$0xff] }
 0x3e6   :  { %1806 = vmatprep.mubr.msk.f32.mxu1 %vm26_vm0, %v474_v49 }
 0x3e7   :  { %1807 = vmatmul.mubr.msk.f32.vlgmr.msra.gmra.mrb[4].mxu1 %vm26_vm0, %v475_v48 }
 0x3e8   :  { %1828 = vmatprep.mubr.msk.f32.mxu1 %vm26_vm0, %v17_v4 }
 0x4ba   :  { %v1808_v51 = vpop.f32.mrb[4].mxu1 }
 0x4bb   :  { %v574_v53 = vadd.f32 %v1808_v51, %v494_v50  ;;  %v568_v54 = vpop.f32.mrb[5].mxu1  ;;  %v2642_v51 = vld [vmem:[%s2895_s2 + $0x258] sm:$0xff] }
 0x4bc   :  { %v569_v55 = vadd.f32 %v568_v54, %v494_v50  ;;  %v2637_v50 = vld [vmem:[%s2895_s2 + $0x1f8] sm:$0xff] }
 0x4bd   :  { %v578_v56 = vadd.f32 %v574_v53, %v2477_v20  ;;  %v613_v20 = vld [vmem:[%s2895_s2 + $0x20] sm:$0xff]  ;;  %v2647_v53 = vld [vmem:[%s2895_s2 + $0x2b8] sm:$0xff] }
 0x4be   :  { %v577_v57 = vadd.f32 %v569_v55, %v2433_v6  ;;  %v612_v6 = vld [vmem:[%s2895_s2 + $0x8] sm:$0xff]  ;;  %v2652_v55 = vld [vmem:[%s2895_s2 + $0x318] sm:$0xff] }
 0x4bf   :  { %v584_v58 = vsel %vm26_vm0, %v578_v56, 0.0  ;;  %v2574_v63 = vpack.i.bf16 %v613_v20, %v612_v6  ;;  %v2052_v35 = vpack.c.bf16 %v613_v20, %v612_v6 }
 0x4c0   :  { %585 = vadd.xlane.f32.xlu0 %v584_v58  ;;  %v581_v59 = vsel %vm26_vm0, %v577_v57, 0.0  ;;  %v2667_v58 = vld [vmem:[%s2895_s2 + $0x2a0] sm:$0xff] }
 0x4c1   :  { %582 = vadd.xlane.f32.xlu1 %v581_v59  ;;  %2053 = vmatprep.subr.bf16.mxu0 %v2052_v35 }
 0x4c2   :  { %2055 = vmatpush3.bf16.msra.mxu0 %v2052_v35 }
 0x4c3   :  { %2057 = vmatprep.subr.bf16.mxu0 %v2056_v36 }
 0x4c6   :  { %2059 = vmatpush3.bf16.msra.mxu0 %v2056_v36 }
 0x4d2   :  { %2274 = vrot.lane.b32.xlu1 %v2566_v62, %s2381_s15 }
 0x4d6   :  { %2269 = vrot.lane.b32.xlu0 %v2574_v63, %s2381_s15 }
 0x54d   :  { %v586_v7 = vpop.xlane.xlu0 %585 }
 0x54e   :  { %v589_v8 = vmul.f32 0.03125, %v586_v7  ;;  %v583_v9 = vpop.xlane.xlu1 %582 }
 0x54f   :  { %v588_v10 = vmul.f32 0.03125, %v583_v9  ;;  %v2683_v9 = vld [vmem:[%s2895_s2 + $0x360] sm:$0xff] }
 0x550   :  { %v591_v12 = vsub.f32 %v578_v56, %v589_v8  ;;  %v2657_v56 = vld [vmem:[%s2895_s2 + $0x330] sm:$0xff]  ;;  %v2678_v8 = vld [vmem:[%s2895_s2 + $0x300] sm:$0xff] }
 0x551   :  { %v590_v13 = vsub.f32 %v577_v57, %v588_v10  ;;  %v2270_v14 = vpop.permute.xlu0 %2269  ;;  %v2662_v57 = vld [vmem:[%s2895_s2 + $0x240] sm:$0xff]  ;;  %v2688_v10 = vld [vmem:[%s2895_s2 + $0x228] sm:$0xff] }
 0x552   :  { %v593_v17 = vmul.f32 %v591_v12, %v591_v12  ;;  %v2272_v18 = vunpack.i.h.bf16 %v2270_v14  ;;  %v2271_v21 = vunpack.i.l.bf16 %v2270_v14  ;;  %v2275_v22 = vpop.permute.xlu1 %2274 }
 0x553   :  { %v592_v23 = vmul.f32 %v590_v13, %v590_v13  ;;  %v2277_v24 = vunpack.i.h.bf16 %v2275_v22  ;;  %v2276_v25 = vunpack.i.l.bf16 %v2275_v22 }
 0x554   :  { %v597_v26 = vsel %vm26_vm0, %v593_v17, 0.0  ;;  %v2060_v28 = vpack.c.bf16 %v2272_v18, %v2271_v21  ;;  %v2696_v17 = vld [vmem:[%s2895_s2 + $0x288] sm:$0xff] }
 0x555   :  { %598 = vadd.xlane.f32.xlu0 %v597_v26  ;;  %v594_v29 = vsel %vm26_vm0, %v592_v23, 0.0  ;;  %v2064_v30 = vpack.c.bf16 %v2277_v24, %v2276_v25  ;;  %v2701_v18 = vld [vmem:[%s2895_s2 + $0x2e8] sm:$0xff] }
 0x556   :  { %595 = vadd.xlane.f32.xlu1 %v594_v29  ;;  %2061 = vmatprep.subr.bf16.mxu1 %v2060_v28  ;;  %v2706_v21 = vld [vmem:[%s2895_s2 + $0x348] sm:$0xff] }
 0x557   :  { %2063 = vmatpush3.bf16.msra.mxu1 %v2060_v28 }
 0x558   :  { %2065 = vmatprep.subr.bf16.mxu1 %v2064_v30 }
 0x55b   :  { %2067 = vmatpush3.bf16.msra.mxu1 %v2064_v30 }
 0x55e   :  { %1829 = vmatmul.mubr.msk.f32.vlgmr.msra.gmra.mrb[6].mxu1 %vm26_vm0, %v18_v31 }
 0x55f   :  { %1831 = vmatprep.mubr.msk.f32.mxu1 %vm26_vm0, %v19_v32 }
 0x562   :  { %1832 = vmatmul.mubr.msk.f32.gmra.mrb[8].mxu1 %vm26_vm0, %v20_v33 }
 0x56b   :  { %715 = vrot.lane.b32.xlu0 %v2601_v34, %s2381_s15 }
 0x5e2   :  { %v599_v0 = vpop.xlane.xlu0 %598 }
 0x5e3   :  { %v601_v1 = vmul.f32 0.03125, %v599_v0  ;;  %v596_v3 = vpop.xlane.xlu1 %595 }
 0x5e4   :  { %v600_v27 = vmul.f32 0.03125, %v596_v3 }
 0x5e5   :  { %v603_v37 = vadd.f32 1e-05, %v601_v1 }
 0x5e6   :  { %v602_v2 = vadd.f32 1e-05, %v600_v27  ;;  %v716_v16 = vpop.permute.xlu0 %715 }
 0x5e7   :  { %2336 = vrsqrt.f32 %v603_v37 }
 0x5e8   :  { %2338 = vrsqrt.f32 %v602_v2 }
 0x5f1   :  { %v2337_v5 = vpop.eup %2336 }
 0x5f2   :  { %v2339_v39 = vpop.eup %2338  ;;  %v607_v40 = vmul.f32 %v2337_v5, %v591_v12 }
 0x5f3   :  { %v606_v15 = vmul.f32 %v2339_v39, %v590_v13 }
 0x5f4   :  { %v609_v42 = vmul.f32 %v607_v40, %v579_v38 }
 0x5f5   :  { %v608_v43 = vmul.f32 %v606_v15, %v579_v38 }
 0x5f6   :  { %v2613_v44 = vadd.f32 %v609_v42, %v580_v41 }
 0x5f7   :  { %v2611_v11 = vadd.f32 %v608_v43, %v580_v41 }
 0x5f9   :  { %1817 = vmatprep.mubr.msk.f32.mxu0 %vm26_vm0, %v2611_v11 }
 0x5fa   :  { %1818 = vmatmul.mubr.msk.f32.vlgmr.msra.gmra.mrb[4].mxu0 %vm26_vm0, %v2613_v44 }
 0x631   :  { %v1830_v45 = vpop.f32.mrb[6].mxu1 }
 0x632   :  { %v802_v48 = vadd.f32 %v1830_v45, %v716_v16  ;;  %v796_v49 = vpop.f32.mrb[7].mxu1 }
 0x633   :  { %v797_v54 = vadd.f32 %v796_v49, %v716_v16 }
 0x634   :  { %v832_v59 = vmul.f32 %v2622_v46, %v802_v48  ;;  %v836_v60 = vmul.f32 %v2627_v19, %v802_v48  ;;  %v840_v61 = vmul.f32 %v2632_v47, %v802_v48  ;;  %v2709_v22 = vmul.f32 %v2657_v56, %v802_v48 }
 0x635   :  { %v831_v6 = vmul.f32 %v2637_v50, %v797_v54  ;;  %v835_v20 = vmul.f32 %v2642_v51, %v797_v54  ;;  %v839_v4 = vmul.f32 %v2647_v53, %v797_v54  ;;  %v1833_v7 = vpop.f32.mrb[8].mxu1  ;;  %v2691_v12 = vmul.f32 %v2652_v55, %v797_v54 }
 0x636   :  { %v812_v13 = vadd.f32 %v1833_v7, %v716_v16  ;;  %v806_v14 = vpop.f32.mrb[9].mxu1 }
 0x637   :  { %v2068_v23 = vpack.c.bf16 %v832_v59, %v831_v6  ;;  %v807_v24 = vadd.f32 %v806_v14, %v716_v16  ;;  %v2080_v25 = vpack.c.bf16 %v836_v60, %v835_v20  ;;  %v2092_v26 = vpack.c.bf16 %v840_v61, %v839_v4 }
 0x638   :  { %v834_v28 = vmul.f32 %v2662_v57, %v812_v13  ;;  %v838_v29 = vmul.f32 %v2667_v58, %v812_v13  ;;  %v842_v30 = vmul.f32 %v2678_v8, %v812_v13  ;;  %v2715_v31 = vmul.f32 %v2683_v9, %v812_v13 }
 0x639   :  { %2070 = vmatprep.subr.msk.bf16.mxu0 %vm2502_vm1, %v2068_v23  ;;  %v833_v32 = vmul.f32 %v2688_v10, %v807_v24  ;;  %v837_v33 = vmul.f32 %v2696_v17, %v807_v24  ;;  %v841_v35 = vmul.f32 %v2701_v18, %v807_v24  ;;  %v2723_v36 = vmul.f32 %v2706_v21, %v807_v24 }
 0x63a   :  { %2073 = vmatpush3.bf16.xpose.msk.msra.mxu0 %vm2502_vm1, %v2068_v23  ;;  %v2278_v0 = vpack.i.bf16 %v832_v59, %v831_v6  ;;  %v2288_v1 = vpack.i.bf16 %v836_v60, %v835_v20  ;;  %v2104_v3 = vpack.c.bf16 %v2709_v22, %v2691_v12  ;;  %v2298_v27 = vpack.i.bf16 %v840_v61, %v839_v4 }
 0x63b   :  { %v2074_v37 = vpack.c.bf16 %v834_v28, %v833_v32  ;;  %v2086_v2 = vpack.c.bf16 %v838_v29, %v837_v33  ;;  %v2283_v5 = vpack.i.bf16 %v834_v28, %v833_v32  ;;  %v2098_v38 = vpack.c.bf16 %v842_v30, %v841_v35 }
 0x63c   :  { %2279 = vrot.lane.b32.xlu1 %v2278_v0, %s2381_s15  ;;  %2289 = vrot.lane.b32.xlu0 %v2288_v1, %s2381_s15  ;;  %v2293_v39 = vpack.i.bf16 %v838_v29, %v837_v33  ;;  %v2303_v40 = vpack.i.bf16 %v842_v30, %v841_v35  ;;  %v2110_v15 = vpack.c.bf16 %v2715_v31, %v2723_v36 }
 0x63d   :  { %2076 = vmatprep.subr.msk.bf16.mxu0 %vm2502_vm1, %v2074_v37  ;;  %v2313_v41 = vpack.i.bf16 %v2715_v31, %v2723_v36  ;;  %v2308_v42 = vpack.i.bf16 %v2709_v22, %v2691_v12 }
 0x640   :  { %2284 = vrot.lane.b32.xlu1 %v2283_v5, %s2381_s15  ;;  %2299 = vrot.lane.b32.xlu0 %v2298_v27, %s2381_s15  ;;  %v847_v27 = vld [vmem:[%s2895_s2 + $0x3a8] sm:$0xff] }
 0x642   :  { %2079 = vmatpush3.bf16.xpose.msk.msra.mxu0 %vm2502_vm1, %v2074_v37 }
 0x643   :  { %2082 = vmatprep.subr.msk.bf16.mxu0 %vm2502_vm1, %v2080_v25 }
 0x644   :  { %2294 = vrot.lane.b32.xlu1 %v2293_v39, %s2381_s15 }
 0x648   :  { %2304 = vrot.lane.b32.xlu1 %v2303_v40, %s2381_s15 }
 0x64a   :  { %2085 = vmatpush3.bf16.xpose.msk.msra.mxu0 %vm2502_vm1, %v2080_v25 }
 0x64b   :  { %2088 = vmatprep.subr.msk.bf16.mxu0 %vm2502_vm1, %v2086_v2 }
 0x652   :  { %2091 = vmatpush3.bf16.xpose.msk.msra.mxu0 %vm2502_vm1, %v2086_v2 }
 0x653   :  { %2094 = vmatprep.subr.msk.bf16.mxu0 %vm2502_vm1, %v2092_v26 }
 0x65a   :  { %2097 = vmatpush3.bf16.xpose.msk.msra.mxu0 %vm2502_vm1, %v2092_v26 }
 0x65b   :  { %2100 = vmatprep.subr.msk.bf16.mxu0 %vm2502_vm1, %v2098_v38 }
 0x662   :  { %2103 = vmatpush3.bf16.xpose.msk.msra.mxu0 %vm2502_vm1, %v2098_v38 }
 0x663   :  { %2106 = vmatprep.subr.msk.bf16.mxu0 %vm2502_vm1, %v2104_v3 }
 0x66a   :  { %2109 = vmatpush3.bf16.xpose.msk.msra.mxu0 %vm2502_vm1, %v2104_v3  ;;  %v848_v3 = vld [vmem:[%s2895_s2 + $0x3c0] sm:$0xff] }
 0x66b   :  { %2112 = vmatprep.subr.msk.bf16.mxu0 %vm2502_vm1, %v2110_v15 }
 0x672   :  { %2115 = vmatpush3.bf16.xpose.msk.msra.mxu0 %vm2502_vm1, %v2110_v15 }
 0x6ae   :  { %v2280_v43 = vpop.permute.xlu1 %2279  ;;  %v2290_v16 = vpop.permute.xlu0 %2289 }
 0x6af   :  { %v2282_v45 = vunpack.i.h.bf16 %v2280_v43  ;;  %v2281_v48 = vunpack.i.l.bf16 %v2280_v43  ;;  %v2292_v54 = vunpack.i.h.bf16 %v2290_v16  ;;  %v2291_v59 = vunpack.i.l.bf16 %v2290_v16 }
 0x6b1   :  { %v2116_v49 = vpack.c.bf16 %v2282_v45, %v2281_v48  ;;  %v2124_v4 = vpack.c.bf16 %v2292_v54, %v2291_v59  ;;  %v2156_v59 = vpack.c.bf16 %v2627_v19, %v2642_v51  ;;  %v2172_v19 = vpack.c.bf16 %v2657_v56, %v2652_v55 }
 0x6b2   :  { %v2285_v60 = vpop.permute.xlu1 %2284  ;;  %v2300_v13 = vpop.permute.xlu0 %2299  ;;  %v2176_v51 = vpack.c.bf16 %v2683_v9, %v2706_v21 }
 0x6b3   :  { %v2287_v61 = vunpack.i.h.bf16 %v2285_v60  ;;  %v2286_v6 = vunpack.i.l.bf16 %v2285_v60  ;;  %2117 = vmatprep.subr.bf16.mxu1 %v2116_v49  ;;  %v2302_v24 = vunpack.i.h.bf16 %v2300_v13  ;;  %v2301_v25 = vunpack.i.l.bf16 %v2300_v13 }
 0x6b4   :  { %2119 = vmatpush3.bf16.msra.mxu1 %v2116_v49  ;;  %v2152_v49 = vpack.c.bf16 %v2662_v57, %v2688_v10  ;;  %v2168_v57 = vpack.c.bf16 %v2678_v8, %v2701_v18 }
 0x6b5   :  { %v2120_v20 = vpack.c.bf16 %v2287_v61, %v2286_v6  ;;  %v2132_v28 = vpack.c.bf16 %v2302_v24, %v2301_v25 }
 0x6b6   :  { %v2295_v7 = vpop.permute.xlu1 %2294 }
 0x6b7   :  { %2121 = vmatprep.subr.bf16.mxu1 %v2120_v20  ;;  %v2297_v14 = vunpack.i.h.bf16 %v2295_v7  ;;  %v2296_v52 = vunpack.i.l.bf16 %v2295_v7 }
 0x6b8   :  { %2123 = vmatpush3.bf16.msra.mxu1 %v2120_v20 }
 0x6b9   :  { %v2128_v23 = vpack.c.bf16 %v2297_v14, %v2296_v52  ;;  %2125 = vmatprep.subr.bf16.mxu1 %v2124_v4 }
 0x6ba   :  { %v2305_v26 = vpop.permute.xlu1 %2304 }
 0x6bb   :  { %v2307_v29 = vunpack.i.h.bf16 %v2305_v26  ;;  %v2306_v30 = vunpack.i.l.bf16 %v2305_v26 }
 0x6bc   :  { %2127 = vmatpush3.bf16.msra.mxu1 %v2124_v4 }
 0x6bd   :  { %2129 = vmatprep.subr.bf16.mxu1 %v2128_v23  ;;  %v2136_v32 = vpack.c.bf16 %v2307_v29, %v2306_v30 }
 0x6c0   :  { %2131 = vmatpush3.bf16.msra.mxu1 %v2128_v23 }
 0x6c1   :  { %2133 = vmatprep.subr.bf16.mxu1 %v2132_v28 }
 0x6c4   :  { %2135 = vmatpush3.bf16.msra.mxu1 %v2132_v28 }
 0x6c5   :  { %2137 = vmatprep.subr.bf16.mxu1 %v2136_v32 }
 0x6c8   :  { %2139 = vmatpush3.bf16.msra.mxu1 %v2136_v32 }
 0x6cd   :  { %v1819_v33 = vpop.f32.mrb[4].mxu0 }
 0x6ce   :  { %v689_v35 = vpop.f32.mrb[5].mxu0  ;;  %v695_v1 = vadd.f32 %v1819_v33, %v2601_v34 }
 0x6cf   :  { %v690_v0 = vadd.f32 %v689_v35, %v2601_v34 }
 0x6d1   :  { %1866 = vmatprep.mubr.msk.f32.mxu0 %vm26_vm0, %v690_v0 }
 0x6d2   :  { %1867 = vmatmul.mubr.msk.f32.vlgmr.msra.gmra.mrb[6].mxu0 %vm26_vm0, %v695_v1 }
 0x7a5   :  { %v1868_v37 = vpop.f32.mrb[6].mxu0 }
 0x7a6   :  { %v975_v2 = vadd.f32 %v1868_v37, %v848_v3  ;;  %v969_v5 = vpop.f32.mrb[7].mxu0  ;;  %v1321_v37 = vld [vmem:[%s2895_s2 + $0x28] sm:$0xff] }
 0x7a7   :  { %v970_v38 = vadd.f32 %v969_v5, %v847_v27  ;;  %v1322_v5 = vld [vmem:[%s2895_s2 + $0x40] sm:$0xff] }
 0x7a8   :  { %980 = vmax.xlane.f32.xlu1 %v975_v2 }
 0x7a9   :  { %978 = vmax.xlane.f32.xlu0 %v970_v38 }
 0x7b9   :  { %2314 = vrot.lane.b32.xlu1 %v2313_v41, %s2381_s15 }
 0x7bd   :  { %2324 = vrot.lane.b32.xlu1 %v2566_v62, %s2380_s28  ;;  %v2148_v62 = vpack.c.bf16 %v2622_v46, %v2637_v50  ;;  %v2160_v46 = vpack.c.bf16 %v2667_v58, %v2696_v17  ;;  %v2164_v50 = vpack.c.bf16 %v2632_v47, %v2647_v53 }
 0x7bf   :  { %2309 = vrot.lane.b32.xlu0 %v2308_v42, %s2381_s15 }
 0x7c3   :  { %2319 = vrot.lane.b32.xlu0 %v2574_v63, %s2380_s28 }
 0x7c7   :  { %1202 = vrot.lane.b32.xlu0 %v2601_v34, %s2380_s28 }
 0x835   :  { %v981_v39 = vpop.xlane.xlu1 %980 }
 0x836   :  { %v983_v40 = vsub.f32 %v975_v2, %v981_v39  ;;  %v979_v15 = vpop.xlane.xlu0 %978 }
 0x837   :  { %v982_v43 = vsub.f32 %v970_v38, %v979_v15  ;;  %v1323_v38 = vld [vmem:[%s2895_s2 + $0x58] sm:$0xff] }
 0x838   :  { %v986_v31 = vmul.f32 1.442695, %v983_v40  ;;  %v2192_v39 = vpack.c.bf16 %v1323_v38, %v1322_v5  ;;  %v1408_v40 = vld [vmem:[%s2895_s2 + $0x60] sm:$0xff]  ;;  %v1409_v15 = vld [vmem:[%s2895_s2 + $0x78] sm:$0xff] }
 0x839   :  { %v984_v36 = vmul.f32 1.442695, %v982_v43  ;;  %v2315_v41 = vpop.permute.xlu1 %2314  ;;  %v1410_v43 = vld [vmem:[%s2895_s2 + $0x90] sm:$0xff]  ;;  %v1500_v5 = vld [vmem:[%s2895_s2 + $0x126] ss:$0 sm:$0xff] }
 0x83a   :  { %v2317_v16 = vunpack.i.h.bf16 %v2315_v41  ;;  %v2310_v45 = vpop.permute.xlu0 %2309  ;;  %v2316_v12 = vunpack.i.l.bf16 %v2315_v41 }
 0x83b   :  { %2340 = vpow2.f32 %v984_v36  ;;  %v2312_v22 = vunpack.i.h.bf16 %v2310_v45  ;;  %v2311_v42 = vunpack.i.l.bf16 %v2310_v45  ;;  %v1411_v36 = vld [vmem:[%s2895_s2 + $0xa8] sm:$0xff]  ;;  %v1413_v45 = vld [vmem:[%s2895_s2 + $0xd8] sm:$0xff] }
 0x83c   :  { %2342 = vpow2.f32 %v986_v31  ;;  %v2144_v48 = vpack.c.bf16 %v2317_v16, %v2316_v12  ;;  %v2196_v31 = vpack.c.bf16 %v1409_v15, %v1408_v40  ;;  %v2200_v41 = vpack.c.bf16 %v1411_v36, %v1410_v43  ;;  %v1412_v16 = vld [vmem:[%s2895_s2 + $0xc0] sm:$0xff] }
 0x83d   :  { %v2140_v63 = vpack.c.bf16 %v2312_v22, %v2311_v42  ;;  %v2325_v17 = vpop.permute.xlu1 %2324  ;;  %v2204_v12 = vpack.c.bf16 %v1413_v45, %v1412_v16  ;;  %v1501_v15 = vld [vmem:[%s2895_s2 + $0x127] ss:$0 sm:$0xff] }
 0x83e   :  { %v2320_v47 = vpop.permute.xlu0 %2319  ;;  %v2327_v8 = vunpack.i.h.bf16 %v2325_v17  ;;  %v2326_v18 = vunpack.i.l.bf16 %v2325_v17 }
 0x83f   :  { %2141 = vmatprep.subr.bf16.mxu1 %v2140_v63  ;;  %v2322_v53 = vunpack.i.h.bf16 %v2320_v47  ;;  %v2321_v58 = vunpack.i.l.bf16 %v2320_v47 }
 0x840   :  { %2143 = vmatpush3.bf16.msra.mxu1 %v2140_v63  ;;  %v2184_v60 = vpack.c.bf16 %v2327_v8, %v2326_v18  ;;  %v1324_v8 = vld [vmem:[%s2895_s2 + $0x130] ss:$0 sm:$0xff] }
 0x841   :  { %2145 = vmatprep.subr.bf16.mxu1 %v2144_v48  ;;  %v2180_v10 = vpack.c.bf16 %v2322_v53, %v2321_v58  ;;  %v1414_v58 = vld [vmem:[%s2895_s2 + $0xf0] sm:$0xff] }
 0x842   :  { %v1203_v7 = vpop.permute.xlu0 %1202 }
 0x843   :  { %2181 = vmatprep.subr.bf16.mxu0 %v2180_v10 }
 0x844   :  { %2147 = vmatpush3.bf16.msra.mxu1 %v2144_v48  ;;  %2183 = vmatpush3.bf16.msra.mxu0 %v2180_v10  ;;  %v1415_v10 = vld [vmem:[%s2895_s2 + $0x108] sm:$0xff] }
 0x845   :  { %v2341_v34 = vpop.eup %2340  ;;  %2149 = vmatprep.subr.bf16.mxu1 %v2148_v62  ;;  %2185 = vmatprep.subr.bf16.mxu0 %v2184_v60  ;;  %v2208_v17 = vpack.c.bf16 %v1415_v10, %v1414_v58 }
 0x846   :  { %v2343_v54 = vpop.eup %2342  ;;  %1901 = vmatprep.mubr.f32.mxu1 %v2341_v34 }
 0x847   :  { %1902 = vmatmul.mubr.f32.vlgmr.msra.gmra.mrb[10].mxu1 %v2343_v54 }
 0x848   :  { %2151 = vmatpush3.bf16.msra.mxu1 %v2148_v62  ;;  %1936 = vmatprep.mubr.f32.mxu1 %v2341_v34 }
 0x849   :  { %2153 = vmatprep.subr.bf16.mxu1 %v2152_v49  ;;  %2187 = vmatpush3.bf16.msra.mxu0 %v2184_v60 }
 0x84a   :  { %2197 = vmatprep.subr.bf16.mxu0 %v2196_v31 }
 0x84c   :  { %2155 = vmatpush3.bf16.msra.mxu1 %v2152_v49 }
 0x84d   :  { %2157 = vmatprep.subr.bf16.mxu1 %v2156_v59 }
 0x850   :  { %2159 = vmatpush3.bf16.msra.mxu1 %v2156_v59 }
 0x851   :  { %2161 = vmatprep.subr.bf16.mxu1 %v2160_v46 }
 0x854   :  { %2163 = vmatpush3.bf16.msra.mxu1 %v2160_v46 }
 0x855   :  { %2165 = vmatprep.subr.bf16.mxu1 %v2164_v50 }
 0x858   :  { %2167 = vmatpush3.bf16.msra.mxu1 %v2164_v50 }
 0x859   :  { %2169 = vmatprep.subr.bf16.mxu1 %v2168_v57 }
 0x85c   :  { %2171 = vmatpush3.bf16.msra.mxu1 %v2168_v57  ;;  %v1289_v57 = vld [vmem:[%s2895_s2 + $0x125] ss:$0 sm:$0xff] }
 0x85d   :  { %2173 = vmatprep.subr.bf16.mxu1 %v2172_v19 }
 0x860   :  { %2175 = vmatpush3.bf16.msra.mxu1 %v2172_v19 }
 0x861   :  { %2177 = vmatprep.subr.bf16.mxu1 %v2176_v51 }
 0x864   :  { %2179 = vmatpush3.bf16.msra.mxu1 %v2176_v51 }
 0x867   :  { %1937 = vmatmul.mubr.f32.vlgmr.msra.gmra.mrb[12].mxu1 %v2343_v54  ;;  %v1288_v54 = vld [vmem:[%s2895_s2 + $0x124] ss:$0 sm:$0xff] }
 0x91a   :  { %v1903_v55 = vpop.f32.mrb[10].mxu1 }
 0x91b   :  { %v1102_v56 = vpop.f32.mrb[11].mxu1 }
 0x93a   :  { %v1938_v61 = vpop.f32.mrb[12].mxu1 }
 0x93b   :  { %2344 = vrcp.f32 %v1938_v61  ;;  %v1177_v9 = vpop.f32.mrb[13].mxu1 }
 0x93c   :  { %2346 = vrcp.f32 %v1177_v9 }
 0x945   :  { %v2345_v21 = vpop.eup %2344 }
 0x946   :  { %v2347_v6 = vpop.eup %2346  ;;  %v1189_v20 = vmul.f32 %v2345_v21, %v1903_v55  ;;  %v1416_v21 = vld [vmem:[%s2895_s2 + $0x121] ss:$0 sm:$0xff] }
 0x947   :  { %v1188_v4 = vmul.f32 %v2347_v6, %v1102_v56 }
 0x949   :  { %1947 = vmatprep.mubr.msk.f32.mxu0 %vm26_vm0, %v1188_v4 }
 0x94a   :  { %1948 = vmatmul.mubr.msk.f32.vlgmr.msra.gmra.mrb[8].mxu0 %vm26_vm0, %v1189_v20 }
 0x94b   :  { %2199 = vmatpush3.bf16.msra.mxu0 %v2196_v31 }
 0x94c   :  { %2201 = vmatprep.subr.bf16.mxu0 %v2200_v41 }
 0x94f   :  { %2203 = vmatpush3.bf16.msra.mxu0 %v2200_v41 }
 0x950   :  { %2205 = vmatprep.subr.bf16.mxu0 %v2204_v12 }
 0x953   :  { %2207 = vmatpush3.bf16.msra.mxu0 %v2204_v12 }
 0x954   :  { %2209 = vmatprep.subr.bf16.mxu0 %v2208_v17 }
 0x957   :  { %2211 = vmatpush3.bf16.msra.mxu0 %v2208_v17 }
 0xa1d   :  { %v1949_v13 = vpop.f32.mrb[8].mxu0 }
 0xa1e   :  { %v1283_v14 = vadd.f32 %v1949_v13, %v1203_v7  ;;  %v1277_v52 = vpop.f32.mrb[9].mxu0 }
 0xa1f   :  { %v1278_v23 = vadd.f32 %v1277_v52, %v1203_v7 }
 0xa20   :  { %v1287_v24 = vadd.f32 %v1283_v14, %v2613_v44 }
 0xa21   :  { %v1286_v25 = vadd.f32 %v1278_v23, %v2611_v11  ;;  %v1320_v11 = vld [vmem:[%s2895_s2 + $0x10] sm:$0xff] }
 0xa22   :  { %v1293_v26 = vsel %vm26_vm0, %v1287_v24, 0.0  ;;  %v2188_v2 = vpack.c.bf16 %v1321_v37, %v1320_v11 }
 0xa23   :  { %1294 = vadd.xlane.f32.xlu0 %v1293_v26  ;;  %v1290_v28 = vsel %vm26_vm0, %v1286_v25, 0.0 }
 0xa24   :  { %1291 = vadd.xlane.f32.xlu1 %v1290_v28  ;;  %2189 = vmatprep.subr.bf16.mxu1 %v2188_v2 }
 0xa25   :  { %2191 = vmatpush3.bf16.msra.mxu1 %v2188_v2 }
 0xa26   :  { %2193 = vmatprep.subr.bf16.mxu1 %v2192_v39 }
 0xa29   :  { %2195 = vmatpush3.bf16.msra.mxu1 %v2192_v39 }
 0xab0   :  { %v1295_v29 = vpop.xlane.xlu0 %1294 }
 0xab1   :  { %v1297_v30 = vmul.f32 0.03125, %v1295_v29  ;;  %v1292_v32 = vpop.xlane.xlu1 %1291 }
 0xab2   :  { %v1296_v33 = vmul.f32 0.03125, %v1292_v32 }
 0xab3   :  { %v1299_v35 = vsub.f32 %v1287_v24, %v1297_v30 }
 0xab4   :  { %v1298_v0 = vsub.f32 %v1286_v25, %v1296_v33 }
 0xab5   :  { %v1301_v1 = vmul.f32 %v1299_v35, %v1299_v35 }
 0xab6   :  { %v1300_v3 = vmul.f32 %v1298_v0, %v1298_v0 }
 0xab7   :  { %v1305_v27 = vsel %vm26_vm0, %v1301_v1, 0.0 }
 0xab8   :  { %1306 = vadd.xlane.f32.xlu1 %v1305_v27  ;;  %v1302_v44 = vsel %vm26_vm0, %v1300_v3, 0.0 }
 0xab9   :  { %1303 = vadd.xlane.f32.xlu0 %v1302_v44 }
 0xb45   :  { %v1307_v22 = vpop.xlane.xlu1 %1306 }
 0xb46   :  { %v1309_v42 = vmul.f32 0.03125, %v1307_v22  ;;  %v1304_v63 = vpop.xlane.xlu0 %1303 }
 0xb47   :  { %v1308_v48 = vmul.f32 0.03125, %v1304_v63 }
 0xb48   :  { %v1311_v62 = vadd.f32 1e-05, %v1309_v42 }
 0xb49   :  { %v1310_v34 = vadd.f32 1e-05, %v1308_v48 }
 0xb4a   :  { %2348 = vrsqrt.f32 %v1311_v62 }
 0xb4b   :  { %2350 = vrsqrt.f32 %v1310_v34 }
 0xb54   :  { %v2349_v49 = vpop.eup %2348 }
 0xb55   :  { %v2351_v59 = vpop.eup %2350  ;;  %v1315_v46 = vmul.f32 %v2349_v49, %v1299_v35 }
 0xb56   :  { %v1314_v50 = vmul.f32 %v2351_v59, %v1298_v0 }
 0xb57   :  { %v1317_v19 = vmul.f32 %v1315_v46, %v1288_v54 }
 0xb58   :  { %v1316_v51 = vmul.f32 %v1314_v50, %v1288_v54 }
 0xb59   :  { %v1319_v53 = vadd.f32 %v1317_v19, %v1289_v57 }
 0xb5a   :  { %v1318_v47 = vadd.f32 %v1316_v51, %v1289_v57 }
 0xb5c   :  { %1958 = vmatprep.mubr.msk.f32.mxu1 %vm26_vm0, %v1318_v47 }
 0xb5d   :  { %1959 = vmatmul.mubr.msk.f32.vlgmr.msra.gmra.mrb[14].mxu1 %vm26_vm0, %v1319_v53 }
 0xc30   :  { %v1960_v18 = vpop.f32.mrb[14].mxu1 }
 0xc31   :  { %v1403_v60 = vadd.f32 %v1960_v18, %v1324_v8  ;;  %v1397_v55 = vpop.f32.mrb[15].mxu1 }
 0xc32   :  { %v1398_v56 = vadd.f32 %v1397_v55, %v1324_v8 }
 0xc33   :  { %v1407_v9 = vmax.f32 %v1403_v60, 0.0 }
 0xc34   :  { %v1406_v61 = vmax.f32 %v1398_v56, 0.0 }
 0xc36   :  { %1977 = vmatprep.mubr.msk.f32.mxu0 %vm279_vm2, %v1406_v61 }
 0xc37   :  { %1978 = vmatmul.mubr.msk.f32.vlgmr.msra.gmra.mrb[10].mxu0 %vm279_vm2, %v1407_v9 }
 0xd0a   :  { %v1979_v6 = vpop.f32.mrb[10].mxu0 }
 0xd0b   :  { %v1495_v20 = vadd.f32 %v1979_v6, %v1416_v21  ;;  %v1489_v4 = vpop.f32.mrb[11].mxu0 }
 0xd0c   :  { %v1490_v7 = vadd.f32 %v1489_v4, %v1416_v21 }
 0xd0d   :  { %v1499_v13 = vadd.f32 %v1495_v20, %v1319_v53 }
 0xd0e   :  { %v1498_v14 = vadd.f32 %v1490_v7, %v1318_v47 }
 0xd0f   :  { %v1505_v52 = vsel %vm26_vm0, %v1499_v13, 0.0 }
 0xd10   :  { %1506 = vadd.xlane.f32.xlu1 %v1505_v52  ;;  %v1502_v23 = vsel %vm26_vm0, %v1498_v14, 0.0 }
 0xd11   :  { %1503 = vadd.xlane.f32.xlu0 %v1502_v23 }
 0xd9d   :  { %v1507_v24 = vpop.xlane.xlu1 %1506 }
 0xd9e   :  { %v1509_v25 = vmul.f32 0.03125, %v1507_v24  ;;  %v1504_v26 = vpop.xlane.xlu0 %1503 }
 0xd9f   :  { %v1508_v28 = vmul.f32 0.03125, %v1504_v26 }
 0xda0   :  { %v1511_v29 = vsub.f32 %v1499_v13, %v1509_v25 }
 0xda1   :  { %v1510_v30 = vsub.f32 %v1498_v14, %v1508_v28 }
 0xda2   :  { %v1513_v32 = vmul.f32 %v1511_v29, %v1511_v29 }
 0xda3   :  { %v1512_v33 = vmul.f32 %v1510_v30, %v1510_v30 }
 0xda4   :  { %v1517_v35 = vsel %vm26_vm0, %v1513_v32, 0.0 }
 0xda5   :  { %1518 = vadd.xlane.f32.xlu1 %v1517_v35  ;;  %v1514_v0 = vsel %vm26_vm0, %v1512_v33, 0.0 }
 0xda6   :  { %1515 = vadd.xlane.f32.xlu0 %v1514_v0 }
 0xe32   :  { %v1519_v1 = vpop.xlane.xlu1 %1518 }
 0xe33   :  { %v1521_v3 = vmul.f32 0.03125, %v1519_v1  ;;  %v1516_v27 = vpop.xlane.xlu0 %1515 }
 0xe34   :  { %v1520_v44 = vmul.f32 0.03125, %v1516_v27 }
 0xe35   :  { %v1523_v11 = vadd.f32 1e-05, %v1521_v3 }
 0xe36   :  { %v1522_v37 = vadd.f32 1e-05, %v1520_v44 }
 0xe37   :  { %2352 = vrsqrt.f32 %v1523_v11 }
 0xe38   :  { %2354 = vrsqrt.f32 %v1522_v37 }
 0xe41   :  { %v2353_v2 = vpop.eup %2352 }
 0xe42   :  { %v2355_v38 = vpop.eup %2354  ;;  %v1527_v39 = vmul.f32 %v2353_v2, %v1511_v29 }
 0xe43   :  { %v1526_v40 = vmul.f32 %v2355_v38, %v1510_v30 }
 0xe44   :  { %v1529_v43 = vmul.f32 %v1527_v39, %v1500_v5 }
 0xe45   :  { %v1528_v31 = vmul.f32 %v1526_v40, %v1500_v5 }
 0xe46   :  { %v1531_v36 = vadd.f32 %v1529_v43, %v1501_v15 }
 0xe47   :  { %v1530_v41 = vadd.f32 %v1528_v31, %v1501_v15 }
 0xe48   :  { %1533 = vst.msk [vmem:[#allocation2 + $0x8] sm:$0xff] %vm26_vm0, %v1531_v36 }
 0xe49   :  { %1532 = vst.msk [vmem:[#allocation2] sm:$0xff] %vm26_vm0, %v1530_v41 }
 0xe4a   :  { %2367 = shalt.err (!%p2364_p4)
}
 0xe4b   :  { %s2368_s8 = scalar_lea.hbm %s2896_s3, 256 }
 0xe4c   :  { %p2369_p5 = scmp.ne.s32.totalorder %s2896_s3, %s2368_s8  ;;  %p2372_p6 = scmp.lt.u32.totalorder %s2368_s8, %s2896_s3 }
 0xe4e   :  { %p2374_p7 = pnand %p2372_p6, %p2369_p5 }
 0xe50   :  { %2377 = shalt.err (!%p2374_p7)
}
 0xe51   :  { %s2384_s1 = smov 128   ;;  %s2385_s13 = smov 8  }
 0xe52   :  { %1545 = dma.vmem_to_hbm [thread:$0]  %s1540_s5, 256, %s2896_s3, [#allocation3], %s2384_s1, %s2384_s1, %s2385_s13  }
 0xe53   :  { %2378 = dma.done.wait [#allocation3], 256  }
 0xe54   :  { %2379 = vsyncadd [#allocation3], 4294967040 }
 0xe55   :  { %1549 = vsyncpa [#allocation3], 1 }

</bundles_post_ra>
